<compile_context>
chip_gen: v7x
topology: tpu7x:2x2x1
jax: 0.10.0
libtpu: 0.0.40
codegen_flags: <defaults>
</compile_context>

<pallas_src>
import jax
import jax.numpy as jnp
from jax.experimental import pallas as pl
from jax.experimental.pallas import tpu as pltpu


def _make_kernel(S, S_pad, block_s, single_s_tile):
    """Builds the kernel closure over static shape information."""
    needs_s_mask = (S % block_s) != 0

    def kernel(kv_ref, qeff_ref, out_ref, wgt_ref, m_sc, l_sc, acc_sc, s_sc):
        # kv_ref:   (TB, TS, H)  kv tile (native dtype)
        # qeff_ref: (1, H)       collapsed query direction  q_eff = wq @ Wm (f32)
        # out_ref:  (TB, H)      attention_output block (resident across S axis)
        # wgt_ref:  (TB, S)      attention_weight block (resident across S axis)
        # m_sc/l_sc: (TB, 1) f32 online-softmax running max / denominator
        # acc_sc:   (TB, H) f32  running weighted sum
        # s_sc:     (TB, S_pad) f32  raw scores (for the final weight write)
        j = pl.program_id(1)
        nj = pl.num_programs(1)

        @pl.when(j == 0)
        def _init():
            m_sc[...] = jnp.full(m_sc.shape, -jnp.inf, jnp.float32)
            l_sc[...] = jnp.zeros(l_sc.shape, jnp.float32)
            acc_sc[...] = jnp.zeros(acc_sc.shape, jnp.float32)

        kv = kv_ref[...]                               # native dtype (TB, TS, H)
        q = qeff_ref[...].astype(jnp.float32)          # (1, H)

        # score = kv . q_eff  -> VPU multiply (promotes to f32) + lane reduce over H.
        s = jnp.sum(kv * q, axis=-1)                   # (TB, TS) f32

        if needs_s_mask:
            col = j * block_s + jax.lax.broadcasted_iota(jnp.int32, s.shape, 1)
            valid = col < S
            s = jnp.where(valid, s, -jnp.inf)

        if not single_s_tile:
            # Stash raw scores; the scores buffer is tiny ((TB, S_pad)) and stays
            # resident across the S grid axis.
            off = pl.multiple_of(j * block_s, block_s)
            s_sc[:, pl.ds(off, block_s)] = s

        # Online softmax update.
        m_prev = m_sc[...]
        m_new = jnp.maximum(m_prev, jnp.max(s, axis=-1, keepdims=True))   # (TB, 1)
        alpha = jnp.exp(m_prev - m_new)                                   # (TB, 1)
        p = jnp.exp(s - m_new)                                            # (TB, TS)
        if needs_s_mask:
            p = jnp.where(valid, p, 0.0)
            contrib = jnp.where(valid[:, :, None], kv * p[:, :, None], 0.0)
        else:
            contrib = kv * p[:, :, None]                                  # f32 promote
        l_sc[...] = alpha * l_sc[...] + jnp.sum(p, axis=-1, keepdims=True)
        acc_sc[...] = alpha * acc_sc[...] + jnp.sum(contrib, axis=1)      # (TB, H)
        m_sc[...] = m_new

        @pl.when(j == nj - 1)
        def _finalize():
            inv_l = 1.0 / l_sc[...]        # exact divide on a (TB,1) vector (cheap)
            out_ref[...] = (acc_sc[...] * inv_l).astype(out_ref.dtype)
            if single_s_tile:
                scores = s
            elif S_pad == S:
                scores = s_sc[...]
            else:
                scores = s_sc[...][:, :S]
            w = jnp.exp(scores - m_sc[...]) * inv_l                        # (TB, S)
            wgt_ref[...] = w.astype(wgt_ref.dtype)

    return kernel


def multiplicative_attention(attention_kv, wm, bm, wq, bq, *,
                             block_b=None, block_s=None):
    """attention_kv: (B, S, H); wm: (H, H); bm: (H,); wq: (1, H); bq: (1,)."""
    B, S, H = attention_kv.shape
    dtype = attention_kv.dtype
    itemsize = dtype.itemsize

    # Collapse Linear_q(Linear_w(kv)) exactly (forward pass only):
    #   score = kv @ Wm^T @ wq^T + const  =  kv . q_eff + const
    # The additive constant (bm @ wq^T + bq) is dropped: softmax is
    # shift-invariant per row, so it is an exact no-op on both outputs.
    q_eff = (wq.astype(jnp.float32) @ wm.astype(jnp.float32)).reshape(1, H)
    del bm, bq  # only affect the dropped constant

    # ---- Tile selection -----------------------------------------------------
    # Target ~4 MiB of kv per grid step: amortizes ~0.35us/step pipeline
    # overhead and sits at ~86%+ of the HBM roofline for mem-bound streaming.
    target = 4 << 20
    row_bytes = S * H * itemsize
    if block_s is None:
        if row_bytes <= target:
            block_s = S                              # whole sequence per tile
        else:
            # S-tiled path for large S*H: lane-aligned sequence tiles.
            block_s = max(128, ((target // max(1, H * itemsize)) // 128) * 128)
            block_s = min(block_s, S)
    block_s = min(block_s, S)
    if block_b is None:
        tile_row_bytes = block_s * H * itemsize
        block_b = max(1, target // max(1, tile_row_bytes))
        if B >= 16:
            # Guarantee >= 2 batch grid steps (keeps both v7x TensorCores busy)
            # while staying sublane-aligned (multiple of 8).
            cap = max(8, (((B + 1) // 2) // 8) * 8)
            block_b = max(8, min(block_b, cap))
            block_b = (block_b // 8) * 8
        block_b = max(1, min(block_b, B))
    block_b = min(block_b, B)

    grid_b = pl.cdiv(B, block_b)
    grid_s = pl.cdiv(S, block_s)
    S_pad = grid_s * block_s
    single_s_tile = (grid_s == 1)

    # ---- Explicit VMEM budget (double-buffered kv + resident outputs + scratch)
    kv_tile_bytes = block_b * block_s * H * itemsize
    out_tile_bytes = block_b * (H + S) * itemsize
    scratch_bytes = 4 * block_b * (H + S_pad + 2)
    vmem_need = 2 * kv_tile_bytes + 2 * out_tile_bytes + scratch_bytes + (2 << 20)
    vmem_limit = int(min(48 << 20, max(vmem_need, 16 << 20)))

    kernel = _make_kernel(S, S_pad, block_s, single_s_tile)
    out_dtype = dtype

    return pl.pallas_call(
        kernel,
        out_shape=(
            jax.ShapeDtypeStruct((B, H), out_dtype),   # attention_output
            jax.ShapeDtypeStruct((B, S), out_dtype),   # attention_weight
        ),
        grid=(grid_b, grid_s),
        in_specs=[
            pl.BlockSpec((block_b, block_s, H), lambda i, j: (i, j, 0)),   # kv tile
            pl.BlockSpec((1, H), lambda i, j: (0, 0)),                     # q_eff
        ],
        out_specs=(
            pl.BlockSpec((block_b, H), lambda i, j: (i, 0)),   # resident across S axis
            pl.BlockSpec((block_b, S), lambda i, j: (i, 0)),   # resident across S axis
        ),
        scratch_shapes=[
            pltpu.VMEM((block_b, 1), jnp.float32),       # m (running max)
            pltpu.VMEM((block_b, 1), jnp.float32),       # l (running denom)
            pltpu.VMEM((block_b, H), jnp.float32),       # acc (running weighted sum)
            pltpu.VMEM((block_b, S_pad), jnp.float32),   # raw scores
        ],
        compiler_params=pltpu.CompilerParams(
            dimension_semantics=("parallel", "arbitrary"),
            vmem_limit_bytes=vmem_limit,
        ),
    )(attention_kv, q_eff)


def _reference(attention_kv, wm, bm, wq, bq):
    # Pure-JAX reference mirroring the PyTorch forward exactly (two linears).
    h = jnp.einsum("bsh,oh->bso", attention_kv, wm) + bm          # Linear(H, H)
    score = (jnp.einsum("bsh,oh->bso", h, wq) + bq)[..., 0]       # Linear(H, 1).squeeze(-1)
    weight = jax.nn.softmax(score, axis=-1)                       # (B, S)
    output = jnp.einsum("bs,bsh->bh", weight, attention_kv)       # bmm + squeeze(1)
    return output, weight


if __name__ == "__main__":
    B, S, H = 2, 8, 32
    key = jax.random.PRNGKey(0)
    k_kv, k_wm, k_bm, k_wq, k_bq = jax.random.split(key, 5)

    attention_kv = jax.random.normal(k_kv, (B, S, H), dtype=jnp.float32)
    # Same shapes as nn.Linear(H, H) / nn.Linear(H, 1) parameters.
    wm = jax.random.normal(k_wm, (H, H), dtype=jnp.float32) * 0.1
    bm = jax.random.normal(k_bm, (H,), dtype=jnp.float32) * 0.1
    wq = jax.random.normal(k_wq, (1, H), dtype=jnp.float32) * 0.1
    bq = jax.random.normal(k_bq, (1,), dtype=jnp.float32) * 0.1

    out, weight = multiplicative_attention(attention_kv, wm, bm, wq, bq)
    out = jax.block_until_ready(out)
    weight = jax.block_until_ready(weight)

    ref_out, ref_weight = _reference(attention_kv, wm, bm, wq, bq)
    assert out.shape == (B, H) and weight.shape == (B, S)
    assert jnp.allclose(weight, ref_weight, atol=1e-4, rtol=1e-4), "weight mismatch"
    assert jnp.allclose(out, ref_out, atol=1e-4, rtol=1e-4), "output mismatch"
    assert jnp.allclose(jnp.sum(weight, axis=-1), 1.0, atol=1e-5), "weights not normalized"

    print("KERNEL_OK")
</pallas_src>

<mosaic_0001>
module attributes {stable_mosaic.version = 11 : i64} {
  func.func @kernel(%arg0: i32, %arg1: i32, %arg2: memref<2x8x32xf32, #tpu.memory_space<vmem>>, %arg3: memref<1x32xf32, #tpu.memory_space<vmem>>, %arg4: memref<2x32xf32, #tpu.memory_space<vmem>>, %arg5: memref<2x8xf32, #tpu.memory_space<vmem>>, %arg6: memref<2x1xf32, #tpu.memory_space<vmem>>, %arg7: memref<2x1xf32, #tpu.memory_space<vmem>>, %arg8: memref<2x32xf32, #tpu.memory_space<vmem>>, %arg9: memref<2x8xf32, #tpu.memory_space<vmem>>) attributes {dimension_semantics = [#tpu.dimension_semantics<parallel>, #tpu.dimension_semantics<arbitrary>], iteration_bounds = array<i64: 1, 1>, scalar_prefetch = 0 : i64, scratch_operands = 4 : i64, tpu.core_type = #tpu.core_type<tc>, window_params = [{transform_indices = @transform_0, window_bounds = array<i64: 2, 8, 32>}, {pipeline_mode = #tpu.pipeline_mode<synchronous>, transform_indices = @transform_1, window_bounds = array<i64: 1, 32>}, {transform_indices = @transform_2, window_bounds = array<i64: 2, 32>}, {transform_indices = @transform_3, window_bounds = array<i64: 2, 8>}]} {
    %c0_i32 = arith.constant 0 : i32
    %0 = arith.cmpi eq, %arg1, %c0_i32 : i32
    %1 = arith.extui %0 : i1 to i32
    %c0_i32_0 = arith.constant 0 : i32
    %2 = arith.cmpi ne, %1, %c0_i32_0 : i32
    scf.if %2 {
      %cst_22 = arith.constant 0xFF800000 : f32
      %37 = vector.broadcast %cst_22 : f32 to vector<2x1xf32>
      %c0_23 = arith.constant 0 : index
      %c0_24 = arith.constant 0 : index
      %38 = vector.load %arg6[%c0_23, %c0_24] : memref<2x1xf32, #tpu.memory_space<vmem>>, vector<2x1xf32>
      tpu.vector_store %arg6[%c0_23, %c0_24], %37 {strides = array<i32>} : memref<2x1xf32, #tpu.memory_space<vmem>>, vector<2x1xf32>,
      %cst_25 = arith.constant 0.000000e+00 : f32
      %39 = vector.broadcast %cst_25 : f32 to vector<2x1xf32>
      %c0_26 = arith.constant 0 : index
      %c0_27 = arith.constant 0 : index
      %40 = vector.load %arg7[%c0_26, %c0_27] : memref<2x1xf32, #tpu.memory_space<vmem>>, vector<2x1xf32>
      tpu.vector_store %arg7[%c0_26, %c0_27], %39 {strides = array<i32>} : memref<2x1xf32, #tpu.memory_space<vmem>>, vector<2x1xf32>,
      %cst_28 = arith.constant 0.000000e+00 : f32
      %41 = vector.broadcast %cst_28 : f32 to vector<2x32xf32>
      %c0_29 = arith.constant 0 : index
      %c0_30 = arith.constant 0 : index
      %42 = vector.load %arg8[%c0_29, %c0_30] : memref<2x32xf32, #tpu.memory_space<vmem>>, vector<2x32xf32>
      tpu.vector_store %arg8[%c0_29, %c0_30], %41 {strides = array<i32>} : memref<2x32xf32, #tpu.memory_space<vmem>>, vector<2x32xf32>,
    } else {
    }
    %c0 = arith.constant 0 : index
    %c0_1 = arith.constant 0 : index
    %c0_2 = arith.constant 0 : index
    %3 = vector.load %arg2[%c0, %c0_1, %c0_2] : memref<2x8x32xf32, #tpu.memory_space<vmem>>, vector<2x8x32xf32>
    %c0_3 = arith.constant 0 : index
    %c0_4 = arith.constant 0 : index
    %4 = vector.load %arg3[%c0_3, %c0_4] : memref<1x32xf32, #tpu.memory_space<vmem>>, vector<1x32xf32>
    %5 = vector.shape_cast %4 : vector<1x32xf32> to vector<1x1x32xf32>
    %6 = vector.broadcast %5 : vector<1x1x32xf32> to vector<2x8x32xf32>
    %7 = arith.mulf %3, %6 : vector<2x8x32xf32>
    %cst = arith.constant dense<0.000000e+00> : vector<2x8xf32>
    %8 = vector.multi_reduction <add>, %7, %cst [2] : vector<2x8x32xf32> to vector<2x8xf32>
    %c0_5 = arith.constant 0 : index
    %c0_6 = arith.constant 0 : index
    %9 = vector.load %arg6[%c0_5, %c0_6] : memref<2x1xf32, #tpu.memory_space<vmem>>, vector<2x1xf32>
    %cst_7 = arith.constant dense<0xFF800000> : vector<2xf32>
    %10 = vector.multi_reduction <maximumf>, %8, %cst_7 [1] : vector<2x8xf32> to vector<2xf32>
    %11 = vector.shape_cast %10 : vector<2xf32> to vector<2x1xf32>
    %12 = arith.maximumf %9, %11 : vector<2x1xf32>
    %13 = arith.subf %9, %12 : vector<2x1xf32>
    %14 = math.exp %13 : vector<2x1xf32>
    %15 = vector.broadcast %12 : vector<2x1xf32> to vector<2x8xf32>
    %16 = arith.subf %8, %15 : vector<2x8xf32>
    %17 = math.exp %16 : vector<2x8xf32>
    %18 = vector.shape_cast %17 : vector<2x8xf32> to vector<2x8x1xf32>
    %19 = vector.broadcast %18 : vector<2x8x1xf32> to vector<2x8x32xf32>
    %20 = arith.mulf %3, %19 : vector<2x8x32xf32>
    %c0_8 = arith.constant 0 : index
    %c0_9 = arith.constant 0 : index
    %21 = vector.load %arg7[%c0_8, %c0_9] : memref<2x1xf32, #tpu.memory_space<vmem>>, vector<2x1xf32>
    %22 = arith.mulf %14, %21 : vector<2x1xf32>
    %cst_10 = arith.constant dense<0.000000e+00> : vector<2xf32>
    %23 = vector.multi_reduction <add>, %17, %cst_10 [1] : vector<2x8xf32> to vector<2xf32>
    %24 = vector.shape_cast %23 : vector<2xf32> to vector<2x1xf32>
    %25 = arith.addf %22, %24 : vector<2x1xf32>
    %c0_11 = arith.constant 0 : index
    %c0_12 = arith.constant 0 : index
    %26 = vector.load %arg7[%c0_11, %c0_12] : memref<2x1xf32, #tpu.memory_space<vmem>>, vector<2x1xf32>
    tpu.vector_store %arg7[%c0_11, %c0_12], %25 {strides = array<i32>} : memref<2x1xf32, #tpu.memory_space<vmem>>, vector<2x1xf32>,
    %c0_13 = arith.constant 0 : index
    %c0_14 = arith.constant 0 : index
    %27 = vector.load %arg8[%c0_13, %c0_14] : memref<2x32xf32, #tpu.memory_space<vmem>>, vector<2x32xf32>
    %28 = vector.broadcast %14 : vector<2x1xf32> to vector<2x32xf32>
    %29 = arith.mulf %28, %27 : vector<2x32xf32>
    %cst_15 = arith.constant dense<0.000000e+00> : vector<2x32xf32>
    %30 = vector.multi_reduction <add>, %20, %cst_15 [1] : vector<2x8x32xf32> to vector<2x32xf32>
    %31 = arith.addf %29, %30 : vector<2x32xf32>
    %c0_16 = arith.constant 0 : index
    %c0_17 = arith.constant 0 : index
    %32 = vector.load %arg8[%c0_16, %c0_17] : memref<2x32xf32, #tpu.memory_space<vmem>>, vector<2x32xf32>
    tpu.vector_store %arg8[%c0_16, %c0_17], %31 {strides = array<i32>} : memref<2x32xf32, #tpu.memory_space<vmem>>, vector<2x32xf32>,
    %c0_18 = arith.constant 0 : index
    %c0_19 = arith.constant 0 : index
    %33 = vector.load %arg6[%c0_18, %c0_19] : memref<2x1xf32, #tpu.memory_space<vmem>>, vector<2x1xf32>
    tpu.vector_store %arg6[%c0_18, %c0_19], %12 {strides = array<i32>} : memref<2x1xf32, #tpu.memory_space<vmem>>, vector<2x1xf32>,
    %c0_i32_20 = arith.constant 0 : i32
    %34 = arith.cmpi eq, %arg1, %c0_i32_20 : i32
    %35 = arith.extui %34 : i1 to i32
    %c0_i32_21 = arith.constant 0 : i32
    %36 = arith.cmpi ne, %35, %c0_i32_21 : i32
    scf.if %36 {
      %c0_22 = arith.constant 0 : index
      %c0_23 = arith.constant 0 : index
      %37 = vector.load %arg7[%c0_22, %c0_23] : memref<2x1xf32, #tpu.memory_space<vmem>>, vector<2x1xf32>
      %cst_24 = arith.constant 1.000000e+00 : f32
      %38 = vector.broadcast %cst_24 : f32 to vector<2x1xf32>
      %39 = arith.divf %38, %37 : vector<2x1xf32>
      %c0_25 = arith.constant 0 : index
      %c0_26 = arith.constant 0 : index
      %40 = vector.load %arg8[%c0_25, %c0_26] : memref<2x32xf32, #tpu.memory_space<vmem>>, vector<2x32xf32>
      %41 = vector.broadcast %39 : vector<2x1xf32> to vector<2x32xf32>
      %42 = arith.mulf %40, %41 : vector<2x32xf32>
      %c0_27 = arith.constant 0 : index
      %c0_28 = arith.constant 0 : index
      %43 = vector.load %arg4[%c0_27, %c0_28] : memref<2x32xf32, #tpu.memory_space<vmem>>, vector<2x32xf32>
      tpu.vector_store %arg4[%c0_27, %c0_28], %42 {strides = array<i32>} : memref<2x32xf32, #tpu.memory_space<vmem>>, vector<2x32xf32>,
      %c0_29 = arith.constant 0 : index
      %c0_30 = arith.constant 0 : index
      %44 = vector.load %arg6[%c0_29, %c0_30] : memref<2x1xf32, #tpu.memory_space<vmem>>, vector<2x1xf32>
      %45 = vector.broadcast %44 : vector<2x1xf32> to vector<2x8xf32>
      %46 = arith.subf %8, %45 : vector<2x8xf32>
      %47 = math.exp %46 : vector<2x8xf32>
      %48 = vector.broadcast %39 : vector<2x1xf32> to vector<2x8xf32>
      %49 = arith.mulf %47, %48 : vector<2x8xf32>
      %c0_31 = arith.constant 0 : index
      %c0_32 = arith.constant 0 : index
      %50 = vector.load %arg5[%c0_31, %c0_32] : memref<2x8xf32, #tpu.memory_space<vmem>>, vector<2x8xf32>
      tpu.vector_store %arg5[%c0_31, %c0_32], %49 {strides = array<i32>} : memref<2x8xf32, #tpu.memory_space<vmem>>, vector<2x8xf32>,
    } else {
    }
    return
  }
  func.func @transform_0(%arg0: i32, %arg1: i32) -> (i32, i32, i32) {
    %c0_i32 = arith.constant 0 : i32
    %c0_i32_0 = arith.constant 0 : i32
    return %arg0, %arg1, %c0_i32 : i32, i32, i32
  }
  func.func @transform_1(%arg0: i32, %arg1: i32) -> (i32, i32) {
    %c0_i32 = arith.constant 0 : i32
    %c0_i32_0 = arith.constant 0 : i32
    %c0_i32_1 = arith.constant 0 : i32
    return %c0_i32, %c0_i32_0 : i32, i32
  }
  func.func @transform_2(%arg0: i32, %arg1: i32) -> (i32, i32) {
    %c0_i32 = arith.constant 0 : i32
    %c0_i32_0 = arith.constant 0 : i32
    return %arg0, %c0_i32 : i32, i32
  }
  func.func @transform_3(%arg0: i32, %arg1: i32) -> (i32, i32) {
    %c0_i32 = arith.constant 0 : i32
    %c0_i32_0 = arith.constant 0 : i32
    return %arg0, %c0_i32 : i32, i32
  }
}

</mosaic_0001>

<bundles_post_ra>
// kernel: tpu_custom_call.1
= control target key start
LH: loop header
LB: loop body
LE: loop exit
PB: predicated region body
PF: predicated region fallthrough
CT: control target
= control target key end

     0   :  { %9 = vsyncpa [#allocation7], 0  ;;  %s470_s0 = inlined_call_operand.hbm [shape: f32[2,8,32], index: 0, kind: input, shape index: {}]   ;;  %s471_s1 = inlined_call_operand.vmem [shape: f32[1,32], index: 1, kind: input, shape index: {}]   ;;  %s472_s2 = inlined_call_operand.hbm [shape: f32[2,32], index: 2, kind: output, shape index: {0}]   ;;  %s473_s3 = inlined_call_operand.hbm [shape: f32[2,8], index: 3, kind: output, shape index: {1}]  }
   0x1   :  { %10 = vsyncpa [#allocation8], 0 }
   0x2   :  { %11 = vsyncpa [#allocation11], 0  ;;  %s349_s12 = smov [#allocation6]   ;;  %s277_s16 = scalar_lea.hbm %s470_s0, 256 }
   0x3   :  { %s17_s13 = sshll.u32 %s349_s12, 4  ;;  %p278_p0 = scmp.ne.s32.totalorder %s470_s0, %s277_s16  ;;  %s18_s13 = int_to_ptr.vmem [resolvable:$true] %s17_s13 }
   0x4   :  { %p281_p1 = scmp.lt.u32.totalorder %s277_s16, %s470_s0 }
   0x6   :  { %p283_p2 = pnand %p281_p1, %p278_p0 }
   0x8   :  { %286 = shalt.err (!%p283_p2)
}
   0x9   :  { %s287_s21 = scalar_lea.vmem %s18_s13, 256  ;;  %p292_p4 = scmp.lt.s32.totalorder %s18_s13, %s18_s13 }
   0xa   :  { %p288_p3 = scmp.ne.s32.totalorder %s18_s13, %s287_s21  ;;  %p293_p5 = scmp.lt.s32.totalorder %s287_s21, %s287_s21 }
   0xc   :  { %p294_p6 = por %p293_p5, %p292_p4 }
   0xe   :  { %p295_p7 = pnand %p294_p6, %p288_p3 }
  0x10   :  { %298 = shalt.err (!%p295_p7)
}
  0x11   :  { %s350_s22 = smov 128   ;;  %s351_s23 = smov 8  }
  0x12   :  { %23 = dma.hbm_to_vmem [thread:$0]  %s470_s0, 256, %s18_s13, [#allocation7], %s350_s22, %s350_s22, %s351_s23  }
  0x13   :  { %343 = dma.done.wait [#allocation7], 256  }
  0x14   :  { %344 = vsyncadd [#allocation7], 4294967040  ;;  %v389_v0 = vld [vmem:[#allocation6] sm:$0xff]  ;;  %v254_v1 = vld [vmem:[%s471_s1] ss:$0 sm:$0xff]  ;;  %vm49_vm0 = vcmask 261120   ;;  %v59_v8 = vlaneseq }
  0x15   :  { %v394_v2 = vld [vmem:[#allocation6 + $0x8] sm:$0xff]  ;;  %v47_v3 = vmul.f32 %v254_v1, %v389_v0  ;;  %vm33_vm1 = vcmask 1024   ;;  %v352_v7 = vmov -inf   ;;  %vm69_vm2 = vcmask 1041409   ;;  %s355_s0 = smov [#allocation9]  }
  0x16   :  { %v48_v4 = vmul.f32 %v254_v1, %v394_v2  ;;  %34 = vst.msk [vmem:[#allocation2] sm:$0x3] %vm33_vm1, %v352_v7  ;;  %v60_v9 = vand.u32 127, %v59_v8  ;;  %v62_v10 = vshrl.u32 %v59_v8, 7  ;;  %vm72_vm3 = vcmask 58368   ;;  %s231_s1 = sshll.u32 %s355_s0, 4  ;;  %s232_s1 = int_to_ptr.vmem [resolvable:$true] %s231_s1 }
  0x17   :  { %v50_v5 = vsel %vm49_vm0, %v47_v3, 0.0  ;;  %v353_v18 = vmov 0   ;;  %v354_v19 = vmov 0.0   ;;  %vm36_vm4 = vcmask 254976   ;;  %s299_s28 = scalar_lea.vmem %s232_s1, 32  ;;  %p304_p9 = scmp.lt.s32.totalorder %s232_s1, %s232_s1 }
  0x18   :  { %51 = vadd.xlane.f32.xlu0 %v50_v5  ;;  %v53_v6 = vsel %vm49_vm0, %v48_v4, 0.0  ;;  %v403_v12 = vsub.s32 %v60_v9, %v62_v10  ;;  %263 = vset.pattern.permute.xlu1 %v353_v18  ;;  %35 = vst.msk [vmem:[#allocation3] sm:$0x3] %vm33_vm1, %v354_v19  ;;  %v415_v24 = vsub.s32 0, %v62_v10  ;;  %v417_v25 = vsub.s32 1, %v62_v10  ;;  %p300_p8 = scmp.ne.s32.totalorder %s232_s1, %s299_s28  ;;  %p305_p10 = scmp.lt.s32.totalorder %s299_s28, %s299_s28 }
  0x19   :  { %264 = vset.pattern.permute.xlu0 %v353_v18  ;;  %37 = vst.msk [vmem:[#allocation4] sm:$0x3] %vm36_vm4, %v354_v19 }
  0x1a   :  { %p306_p11 = por %p305_p10, %p304_p9 }
  0x1c   :  { %54 = vadd.xlane.f32.xlu0 %v53_v6  ;;  %p307_p12 = pnand %p306_p11, %p300_p8 }
  0x1d   :  { %v56_v20 = vld [vmem:[#allocation2] sm:$0x3] }
  0x1f   :  { %v112_v44 = vld [vmem:[#allocation3] sm:$0x3] }
  0xa5   :  { %v401_v11 = vpop.xlane.xlu0 %51 }
  0xa6   :  { %v64_v14 = vrot.slane %v401_v11, %v403_v12 }
  0xa9   :  { %v405_v13 = vpop.xlane.xlu0 %54 }
  0xaa   :  { %v68_v15 = vrot.slane %v405_v13, %v403_v12 }
  0xac   :  { %v70_v16 = vsel %vm69_vm2, %v68_v15, %v64_v14 }
  0xad   :  { %v73_v17 = vsel %vm72_vm3, %v70_v16, -inf }
  0xae   :  { %74 = vmax.xlane.f32.xlu1 %v73_v17 }
 0x13b   :  { %v75_v21 = vpop.xlane.xlu1 %74 }
 0x13c   :  { %v76_v22 = vmax.f32 %v56_v20, %v75_v21 }
 0x13e   :  { %v77_v23 = vsub.f32 %v56_v20, %v76_v22  ;;  %158 = vst.msk [vmem:[#allocation2] sm:$0x3] %vm33_vm1, %v76_v22  ;;  %82 = vperm.xlu1 %263, %v76_v22  }
 0x140   :  { %v78_v42 = vmul.f32 1.442695, %v77_v23 }
 0x145   :  { %v173_v35 = vld [vmem:[#allocation2] sm:$0x3] }
 0x1bd   :  { %v83_v26 = vpop.permute.xlu1 %82 }
 0x1be   :  { %v87_v27 = vrot.slane %v83_v26, %v415_v24  ;;  %v91_v28 = vrot.slane %v83_v26, %v417_v25 }
 0x1c0   :  { %v94_v29 = vsub.f32 %v401_v11, %v87_v27  ;;  %v95_v30 = vsub.f32 %v405_v13, %v91_v28 }
 0x1c2   :  { %v96_v31 = vmul.f32 1.442695, %v94_v29  ;;  %v98_v32 = vmul.f32 1.442695, %v95_v30 }
 0x1c4   :  { %265 = vpow2.f32 %v96_v31 }
 0x1c5   :  { %267 = vpow2.f32 %v98_v32 }
 0x1c6   :  { %269 = vpow2.f32 %v78_v42 }
 0x1ce   :  { %v266_v33 = vpop.eup %265 }
 0x1cf   :  { %v268_v34 = vpop.eup %267  ;;  %102 = vperm.xlu0 %264, %v266_v33  }
 0x1d0   :  { %107 = vperm.xlu1 %263, %v268_v34   ;;  %v270_v43 = vpop.eup %269 }
 0x1d1   :  { %v113_v45 = vmul.f32 %v270_v43, %v112_v44 }
 0x1d3   :  { %176 = vperm.xlu0 %264, %v173_v35  }
 0x24e   :  { %v103_v36 = vpop.permute.xlu0 %102 }
 0x24f   :  { %v108_v37 = vpop.permute.xlu1 %107  ;;  %v117_v38 = vrot.slane %v103_v36, %v403_v12  ;;  %v110_v51 = vmul.f32 %v103_v36, %v389_v0 }
 0x250   :  { %v121_v39 = vrot.slane %v108_v37, %v403_v12  ;;  %v111_v50 = vmul.f32 %v108_v37, %v394_v2 }
 0x251   :  { %v137_v54 = vsel %vm49_vm0, %v110_v51, 0.0 }
 0x252   :  { %v122_v40 = vsel %vm69_vm2, %v121_v39, %v117_v38  ;;  %v177_v52 = vpop.permute.xlu0 %176  ;;  %v144_v53 = vsel %vm49_vm0, %v111_v50, 0.0  ;;  %v138_v58 = vrot.slane %v137_v54, 4 }
 0x253   :  { %v124_v41 = vsel %vm72_vm3, %v122_v40, 0.0  ;;  %v181_v55 = vrot.slane %v177_v52, %v415_v24  ;;  %v185_v56 = vrot.slane %v177_v52, %v417_v25  ;;  %v145_v57 = vrot.slane %v144_v53, 4 }
 0x254   :  { %125 = vadd.xlane.f32.xlu1 %v124_v41  ;;  %v139_v62 = vadd.f32 %v138_v58, %v137_v54 }
 0x255   :  { %v188_v59 = vsub.f32 %v401_v11, %v181_v55  ;;  %v189_v60 = vsub.f32 %v405_v13, %v185_v56  ;;  %v146_v61 = vadd.f32 %v145_v57, %v144_v53  ;;  %v130_v13 = vld [vmem:[#allocation4] sm:$0x3] }
 0x256   :  { %v140_v2 = vrot.slane %v139_v62, 2 }
 0x257   :  { %v190_v63 = vmul.f32 1.442695, %v188_v59  ;;  %v192_v1 = vmul.f32 1.442695, %v189_v60  ;;  %v147_v0 = vrot.slane %v146_v61, 2 }
 0x258   :  { %v141_v4 = vadd.f32 %v140_v2, %v139_v62 }
 0x259   :  { %v148_v3 = vadd.f32 %v147_v0, %v146_v61 }
 0x25a   :  { %v142_v6 = vrot.slane %v141_v4, 1 }
 0x25b   :  { %v149_v5 = vrot.slane %v148_v3, 1 }
 0x25c   :  { %v143_v14 = vadd.f32 %v142_v6, %v141_v4 }
 0x25d   :  { %v150_v15 = vadd.f32 %v149_v5, %v148_v3 }
 0x25f   :  { %v153_v20 = vsel %vm69_vm2, %v150_v15, %v143_v14 }
 0x2e1   :  { %v126_v46 = vpop.xlane.xlu1 %125 }
 0x2e2   :  { %v127_v47 = vadd.f32 %v126_v46, %v113_v45 }
 0x2e4   :  { %129 = vst.msk [vmem:[#allocation3] sm:$0x3] %vm33_vm1, %v127_v47 }
 0x2eb   :  { %v162_v48 = vld [vmem:[#allocation3] sm:$0x3] }
 0x2ec   :  { %271 = vrcp.f32 %v162_v48 }
 0x2ed   :  { %273 = vpow2.f32 %v190_v63 }
 0x2ee   :  { %275 = vpow2.f32 %v192_v1 }
 0x2f6   :  { %v272_v49 = vpop.eup %271 }
 0x2f7   :  { %168 = vperm.xlu0 %264, %v272_v49   ;;  %v274_v8 = vpop.eup %273 }
 0x2f8   :  { %v276_v11 = vpop.eup %275 }
 0x2fb   :  { %133 = vperm.xlu0 %264, %v270_v43  }
 0x376   :  { %v169_v7 = vpop.permute.xlu0 %168 }
 0x377   :  { %v197_v9 = vrot.slane %v169_v7, %v415_v24  ;;  %v201_v10 = vrot.slane %v169_v7, %v417_v25 }
 0x379   :  { %v205_v16 = vmul.f32 %v276_v11, %v201_v10  ;;  %v204_v17 = vmul.f32 %v274_v8, %v197_v9 }
 0x37a   :  { %v134_v18 = vpop.permute.xlu0 %133 }
 0x37b   :  { %v136_v19 = vmul.f32 %v134_v18, %v130_v13  ;;  %212 = vperm.xlu0 %264, %v205_v16   ;;  %209 = vperm.xlu1 %263, %v204_v17  }
 0x37d   :  { %v155_v21 = vadd.f32 %v153_v20, %v136_v19 }
 0x37f   :  { %157 = vst.msk [vmem:[#allocation4] sm:$0x3] %vm36_vm4, %v155_v21 }
 0x386   :  { %v165_v22 = vld [vmem:[#allocation4] sm:$0x3] }
 0x387   :  { %v171_v23 = vmul.f32 %v169_v7, %v165_v22 }
 0x389   :  { %172 = vst.msk [vmem:[#allocation9] sm:$0x3] %vm36_vm4, %v171_v23 }
 0x38a   :  { %310 = shalt.err (!%p307_p12)
}
 0x38b   :  { %s311_s4 = scalar_lea.hbm %s472_s2, 32 }
 0x38c   :  { %p312_p13 = scmp.ne.s32.totalorder %s472_s2, %s311_s4  ;;  %p315_p0 = scmp.lt.u32.totalorder %s311_s4, %s472_s2 }
 0x38e   :  { %p317_p1 = pnand %p315_p0, %p312_p13 }
 0x390   :  { %320 = shalt.err (!%p317_p1)
}
 0x391   :  { %234 = dma.vmem_to_hbm [thread:$0]  %s232_s1, 32, %s472_s2, [#allocation8]  }
 0x392   :  { %s356_s11 = smov [#allocation10]  }
 0x393   :  { %s241_s12 = sshll.u32 %s356_s11, 4  ;;  %s242_s12 = int_to_ptr.vmem [resolvable:$true] %s241_s12 }
 0x394   :  { %s321_s13 = scalar_lea.vmem %s242_s12, 32  ;;  %p326_p3 = scmp.lt.s32.totalorder %s242_s12, %s242_s12 }
 0x395   :  { %p322_p2 = scmp.ne.s32.totalorder %s242_s12, %s321_s13  ;;  %p327_p4 = scmp.lt.s32.totalorder %s321_s13, %s321_s13 }
 0x397   :  { %p328_p5 = por %p327_p4, %p326_p3 }
 0x399   :  { %p329_p6 = pnand %p328_p5, %p322_p2 }
 0x3fa   :  { %v210_v24 = vpop.permute.xlu1 %209  ;;  %v213_v25 = vpop.permute.xlu0 %212 }
 0x3fb   :  { %v217_v26 = vrot.slane %v210_v24, %v403_v12  ;;  %v221_v27 = vrot.slane %v213_v25, %v403_v12 }
 0x3fd   :  { %v222_v28 = vsel %vm69_vm2, %v221_v27, %v217_v26 }
 0x3fe   :  { %224 = vst.msk [vmem:[#allocation10] sm:$0x3] %vm72_vm3, %v222_v28 }
 0x3ff   :  { %332 = shalt.err (!%p329_p6)
}
 0x400   :  { %s333_s15 = scalar_lea.hbm %s473_s3, 32 }
 0x401   :  { %p334_p7 = scmp.ne.s32.totalorder %s473_s3, %s333_s15  ;;  %p337_p8 = scmp.lt.u32.totalorder %s333_s15, %s473_s3 }
 0x403   :  { %p339_p9 = pnand %p337_p8, %p334_p7 }
 0x405   :  { %342 = shalt.err (!%p339_p9)
}
 0x406   :  { %244 = dma.vmem_to_hbm [thread:$0]  %s242_s12, 32, %s473_s3, [#allocation11]  }
 0x407   :  { %345 = dma.done.wait [#allocation8], 32  }
 0x408   :  { %346 = vsyncadd [#allocation8], 4294967264 }
 0x409   :  { %347 = dma.done.wait [#allocation11], 32  }
 0x40a   :  { %348 = vsyncadd [#allocation11], 4294967264 }
 0x40b   :  { %251 = vsyncpa [#allocation7], 1 }
 0x40c   :  { %252 = vsyncpa [#allocation8], 1 }
 0x40d   :  { %253 = vsyncpa [#allocation11], 1 }

</bundles_post_ra>
